<compile_context>
chip_gen: v7x
topology: tpu7x:2x2x1
jax: 0.10.0
libtpu: 0.0.40
codegen_flags: <defaults>
</compile_context>

<pallas_src>
import functools

import jax
import jax.numpy as jnp
from jax.experimental import pallas as pl
from jax.experimental.pallas import tpu as pltpu

# Hyperparameters of PPOLoss.__init__ (no learnable weights).
CLIP_EPSILON = 0.2
VALUE_LOSS_COEF = 0.5   # unused by forward (it returns only the policy term)
ENTROPY_COEF = 0.01     # unused by forward
GAMMA = 0.99
LAM = 0.95              # forward reads only advantages[:, -1]; lam cancels out

_LANE = 128


def _cdiv(a, b):
    return -(-a // b)


def _round_up(a, b):
    return _cdiv(a, b) * b


def _ppo_loss_kernel(ap_ref, oap_ref, adv_ref, o_ref, *,
                     clip_epsilon, batch, tile_b):
    # One batch tile: ap/oap = (D, A, TB) in source dtype, adv = (1, TB) f32.
    ap = ap_ref[...]            # keep bf16 packed through the elementwise stage
    oap = oap_ref[...]
    d = ap.shape[0]

    # max over D == elementwise max across the D leading slabs (lane-dense VPU
    # work; no cross-lane XLU reduction needed).
    maxv = jnp.max(ap, axis=0, keepdims=True)                       # (1, A, TB)
    d_iota = jax.lax.broadcasted_iota(jnp.int32, ap.shape, 0)
    # first index attaining the max (torch argmax tie-breaking), then gather
    # the old policy at that index via a select + sum over D (exact: one
    # nonzero term per position).
    idx = jnp.min(jnp.where(ap == maxv, d_iota, d), axis=0)         # (A, TB)
    old = jnp.sum(jnp.where(d_iota == idx[None], oap, jnp.zeros_like(oap)),
                  axis=0)                                           # (A, TB)

    curr = maxv[0].astype(jnp.float32)                              # (A, TB)
    old = old.astype(jnp.float32)
    adv = adv_ref[...]                                              # (1, TB)

    # ratio via EUP reciprocal (exact; approx=True would miss the 1e-5 tol).
    ratio = curr * pl.reciprocal(old, approx=False)                 # (A, TB)

    # min(r*a, clip(r, lo, hi)*a) == a * (a >= 0 ? min(r, hi) : max(r, lo))
    sel = jnp.where(adv >= 0.0,
                    jnp.minimum(ratio, 1.0 + clip_epsilon),
                    jnp.maximum(ratio, 1.0 - clip_epsilon))         # (A, TB)

    # Ragged last tile: lanes past the batch end hold garbage (possibly 0/NaN).
    # jnp.where is a select, so NaN/Inf there cannot poison the sum.
    lane = jax.lax.broadcasted_iota(jnp.int32, sel.shape, 1)
    valid = lane < (batch - pl.program_id(0) * tile_b)
    contrib = jnp.where(valid, sel * adv, 0.0)

    o_ref[...] = (-jnp.sum(contrib)).reshape(1, 1, 1)


def ppo_loss(action_policy, old_action_policy, rewards, values,
             clip_epsilon=CLIP_EPSILON, gamma=GAMMA):
    ap = jnp.squeeze(action_policy, axis=1)                         # (B, A, D)
    oap = jnp.squeeze(old_action_policy, axis=1)
    B, A, D = ap.shape

    # Lane-dense layout plumbing (single XLA copy): batch on the 128-lane axis.
    ap_t = jnp.transpose(ap, (2, 1, 0))                             # (D, A, B)
    oap_t = jnp.transpose(oap, (2, 1, 0))

    # Last-step advantage with zero bootstrap: r_{T-1} + gamma*V_T - V_{T-1}.
    adv = (rewards[:, -1, 0] + gamma * 0.0
           - values[:, -1, 0]).astype(jnp.float32).reshape(1, B)    # (1, B)

    # --- padding-aware batch tiling (batch is the lane axis) ----------------
    itemsize = jnp.dtype(ap.dtype).itemsize
    sublane = {4: 8, 2: 16, 1: 32}.get(itemsize, 8)
    # real VMEM bytes of one 128-lane wide column group of an input block
    lane_group_bytes = D * _round_up(A, sublane) * _LANE * itemsize

    if B <= _LANE:
        tb = B                              # full-dim block (exempt from the 128 rule)
    else:
        target_block_bytes = 1 << 20        # ~1 MiB of *real* VMEM per input block
        groups = max(1, target_block_bytes // lane_group_bytes)
        tb = min(groups * _LANE, _round_up(B, _LANE))
        if tb >= B:
            # keep >= 2 tiles so ("parallel",) shards across v7x's two TCs
            tb = _round_up(_cdiv(B, 2), _LANE)
        tb = max(_LANE, tb)
    num_tiles = _cdiv(B, tb)

    block_bytes = lane_group_bytes * max(1, _cdiv(tb, _LANE))
    block_i32_bytes = block_bytes * (4 // itemsize)
    # 2 inputs x 2 pipeline buffers + int32/bool elementwise intermediates +
    # headroom; capped well inside v7x's 64 MiB physical / 32 MiB default scope.
    vmem_limit = int(min(30 << 20,
                         max(6 << 20,
                             4 * block_bytes + 4 * block_i32_bytes + (2 << 20))))

    kernel = functools.partial(_ppo_loss_kernel, clip_epsilon=clip_epsilon,
                               batch=B, tile_b=tb)
    partial_sums = pl.pallas_call(
        kernel,
        out_shape=jax.ShapeDtypeStruct((num_tiles, 1, 1), jnp.float32),
        grid=(num_tiles,),
        in_specs=[
            pl.BlockSpec((D, A, tb), lambda i: (0, 0, i)),
            pl.BlockSpec((D, A, tb), lambda i: (0, 0, i)),
            pl.BlockSpec((1, tb), lambda i: (0, i)),
        ],
        out_specs=pl.BlockSpec((1, 1, 1), lambda i: (i, 0, 0)),
        compiler_params=pltpu.CompilerParams(
            dimension_semantics=("parallel",),
            vmem_limit_bytes=vmem_limit),
    )(ap_t, oap_t, adv)

    # Mean over the batch (masked ragged lanes contribute exactly 0).
    return jnp.sum(partial_sums) / B


# ------------------------- pure-JAX reference -------------------------------
def _compute_gae_ref(rewards, values, gamma, lam):
    # rewards, values: (B, T, 1); bootstrap V_T = 0.
    r = rewards[..., 0]
    v = values[..., 0]
    B, T = r.shape
    v_next = jnp.concatenate([v[:, 1:], jnp.zeros((B, 1), r.dtype)], axis=1)
    deltas = r + gamma * v_next - v

    def step(gae, d):
        gae = d + gamma * lam * gae
        return gae, gae

    _, advs_rev = jax.lax.scan(step, jnp.zeros(B, r.dtype),
                               jnp.flip(deltas, 1).T)
    advs = jnp.flip(advs_rev.T, 1)
    return advs[..., None]                                          # (B, T, 1)


def _ppo_loss_ref(action_policy, old_action_policy, rewards, values):
    curr = jnp.max(action_policy, axis=3)[:, 0, :]                  # (B, A)
    idx = jnp.argmax(action_policy, axis=3)[..., None]              # (B,1,A,1)
    old = jnp.take_along_axis(old_action_policy, idx, axis=3)[:, 0, :, 0]
    adv = _compute_gae_ref(rewards, values, GAMMA, LAM)[:, -1, 0]   # (B,)
    ratio = curr / old
    surr1 = ratio * adv[:, None]
    surr2 = jnp.clip(ratio, 1 - CLIP_EPSILON, 1 + CLIP_EPSILON) * adv[:, None]
    return jnp.mean(jnp.sum(-jnp.minimum(surr1, surr2), axis=1))


if __name__ == "__main__":
    # ---- small test (single tile, f32) -------------------------------------
    B, A, D, T = 2, 8, 16, 8
    key = jax.random.PRNGKey(0)
    k1, k2, k3, k4 = jax.random.split(key, 4)

    # positive "probabilities" so ratios are well defined
    action_policy = jax.random.uniform(k1, (B, 1, A, D), jnp.float32,
                                       minval=0.1, maxval=1.0)
    old_action_policy = jax.random.uniform(k2, (B, 1, A, D), jnp.float32,
                                           minval=0.1, maxval=1.0)
    rewards = jax.random.normal(k3, (B, T, 1), jnp.float32)
    values = jax.random.normal(k4, (B, T, 1), jnp.float32)

    loss = jax.block_until_ready(
        ppo_loss(action_policy, old_action_policy, rewards, values))
    ref = _ppo_loss_ref(action_policy, old_action_policy, rewards, values)
    assert jnp.allclose(loss, ref, rtol=1e-5, atol=1e-5), (loss, ref)

    # ---- multi-tile / ragged-lane / bf16 path -------------------------------
    B2 = 300
    j1, j2, j3, j4 = jax.random.split(jax.random.PRNGKey(1), 4)
    ap2 = jax.random.uniform(j1, (B2, 1, A, D), jnp.float32,
                             minval=0.1, maxval=1.0).astype(jnp.bfloat16)
    oap2 = jax.random.uniform(j2, (B2, 1, A, D), jnp.float32,
                              minval=0.1, maxval=1.0).astype(jnp.bfloat16)
    r2 = jax.random.normal(j3, (B2, T, 1), jnp.float32)
    v2 = jax.random.normal(j4, (B2, T, 1), jnp.float32)

    loss2 = jax.block_until_ready(ppo_loss(ap2, oap2, r2, v2))
    ref2 = _ppo_loss_ref(ap2.astype(jnp.float32), oap2.astype(jnp.float32),
                         r2, v2)
    assert jnp.allclose(loss2, ref2, rtol=1e-4, atol=1e-4), (loss2, ref2)

    print("KERNEL_OK")
</pallas_src>

<mosaic_0001>
module attributes {stable_mosaic.version = 11 : i64} {
  func.func @_ppo_loss_kernel(%arg0: i32, %arg1: memref<16x8x2xf32, #tpu.memory_space<vmem>>, %arg2: memref<16x8x2xf32, #tpu.memory_space<vmem>>, %arg3: memref<1x2xf32, #tpu.memory_space<vmem>>, %arg4: memref<1x1x1xf32, #tpu.memory_space<vmem>>) attributes {dimension_semantics = [#tpu.dimension_semantics<parallel>], iteration_bounds = array<i64: 1>, scalar_prefetch = 0 : i64, scratch_operands = 0 : i64, tpu.core_type = #tpu.core_type<tc>, window_params = [{transform_indices = @transform_0, window_bounds = array<i64: 16, 8, 2>}, {transform_indices = @transform_1, window_bounds = array<i64: 16, 8, 2>}, {transform_indices = @transform_2, window_bounds = array<i64: 1, 2>}, {transform_indices = @transform_3, window_bounds = array<i64: 1, 1, 1>}]} {
    %c0 = arith.constant 0 : index
    %c0_0 = arith.constant 0 : index
    %c0_1 = arith.constant 0 : index
    %0 = vector.load %arg1[%c0, %c0_0, %c0_1] : memref<16x8x2xf32, #tpu.memory_space<vmem>>, vector<16x8x2xf32>
    %c0_2 = arith.constant 0 : index
    %c0_3 = arith.constant 0 : index
    %c0_4 = arith.constant 0 : index
    %1 = vector.load %arg2[%c0_2, %c0_3, %c0_4] : memref<16x8x2xf32, #tpu.memory_space<vmem>>, vector<16x8x2xf32>
    %cst = arith.constant dense<0xFF800000> : vector<8x2xf32>
    %2 = vector.multi_reduction <maximumf>, %0, %cst [0] : vector<16x8x2xf32> to vector<8x2xf32>
    %3 = vector.shape_cast %2 : vector<8x2xf32> to vector<1x8x2xf32>
    %4 = tpu.iota {dimensions = array<i32: 0>} : vector<16x8x2xi32>
    %5 = vector.broadcast %3 : vector<1x8x2xf32> to vector<16x8x2xf32>
    %6 = arith.cmpf oeq, %0, %5 : vector<16x8x2xf32>
    %c16_i32 = arith.constant 16 : i32
    %7 = vector.broadcast %c16_i32 : i32 to vector<16x8x2xi32>
    %8 = arith.select %6, %4, %7 : vector<16x8x2xi1>, vector<16x8x2xi32>
    %cst_5 = arith.constant dense<2147483647> : vector<8x2xi32>
    %9 = vector.multi_reduction <minsi>, %8, %cst_5 [0] : vector<16x8x2xi32> to vector<8x2xi32>
    %10 = vector.shape_cast %9 : vector<8x2xi32> to vector<1x8x2xi32>
    %11 = vector.broadcast %10 : vector<1x8x2xi32> to vector<16x8x2xi32>
    %12 = arith.cmpi eq, %4, %11 : vector<16x8x2xi32>
    %cst_6 = arith.constant 0.000000e+00 : f32
    %13 = vector.broadcast %cst_6 : f32 to vector<16x8x2xf32>
    %14 = arith.select %12, %1, %13 : vector<16x8x2xi1>, vector<16x8x2xf32>
    %cst_7 = arith.constant dense<0.000000e+00> : vector<8x2xf32>
    %15 = vector.multi_reduction <add>, %14, %cst_7 [0] : vector<16x8x2xf32> to vector<8x2xf32>
    %16 = vector.shape_cast %3 : vector<1x8x2xf32> to vector<8x2xf32>
    %c0_8 = arith.constant 0 : index
    %c0_9 = arith.constant 0 : index
    %17 = vector.load %arg3[%c0_8, %c0_9] : memref<1x2xf32, #tpu.memory_space<vmem>>, vector<1x2xf32>
    %18 = tpu.reciprocal %15 : vector<8x2xf32> -> vector<8x2xf32>
    %19 = arith.mulf %16, %18 : vector<8x2xf32>
    %cst_10 = arith.constant 0.000000e+00 : f32
    %20 = vector.broadcast %cst_10 : f32 to vector<1x2xf32>
    %21 = arith.cmpf oge, %17, %20 : vector<1x2xf32>
    %cst_11 = arith.constant 1.200000e+00 : f32
    %22 = vector.broadcast %cst_11 : f32 to vector<8x2xf32>
    %23 = arith.minimumf %19, %22 : vector<8x2xf32>
    %cst_12 = arith.constant 8.000000e-01 : f32
    %24 = vector.broadcast %cst_12 : f32 to vector<8x2xf32>
    %25 = arith.maximumf %19, %24 : vector<8x2xf32>
    %26 = vector.shape_cast %21 : vector<1x2xi1> to vector<1x2xi1>
    %27 = vector.broadcast %26 : vector<1x2xi1> to vector<8x2xi1>
    %28 = arith.select %27, %23, %25 : vector<8x2xi1>, vector<8x2xf32>
    %29 = tpu.iota {dimensions = array<i32: 1>} : vector<8x2xi32>
    %c2_i32 = arith.constant 2 : i32
    %30 = arith.muli %arg0, %c2_i32 : i32
    %c2_i32_13 = arith.constant 2 : i32
    %31 = arith.subi %c2_i32_13, %30 : i32
    %32 = vector.broadcast %31 : i32 to vector<8x2xi32>
    %33 = arith.cmpi slt, %29, %32 : vector<8x2xi32>
    %34 = vector.broadcast %17 : vector<1x2xf32> to vector<8x2xf32>
    %35 = arith.mulf %28, %34 : vector<8x2xf32>
    %cst_14 = arith.constant 0.000000e+00 : f32
    %36 = vector.broadcast %cst_14 : f32 to vector<8x2xf32>
    %37 = arith.select %33, %35, %36 : vector<8x2xi1>, vector<8x2xf32>
    %38 = vector.shape_cast %37 : vector<8x2xf32> to vector<1x8x2xf32>
    %cst_15 = arith.constant dense<0.000000e+00> : vector<1xf32>
    %39 = vector.multi_reduction <add>, %38, %cst_15 [1, 2] : vector<1x8x2xf32> to vector<1xf32>
    %40 = vector.shape_cast %39 : vector<1xf32> to vector<1x1x1xf32>
    %41 = vector.extract %40[0, 0, 0] : f32 from vector<1x1x1xf32>
    %cst_16 = arith.constant 0.000000e+00 : f32
    %42 = arith.subf %cst_16, %41 : f32
    %43 = vector.broadcast %42 : f32 to vector<1x1x1xf32>
    %c0_17 = arith.constant 0 : index
    %c0_18 = arith.constant 0 : index
    %c0_19 = arith.constant 0 : index
    %44 = vector.load %arg4[%c0_17, %c0_18, %c0_19] : memref<1x1x1xf32, #tpu.memory_space<vmem>>, vector<1x1x1xf32>
    tpu.vector_store %arg4[%c0_17, %c0_18, %c0_19], %43 {strides = array<i32>} : memref<1x1x1xf32, #tpu.memory_space<vmem>>, vector<1x1x1xf32>,
    return
  }
  func.func @transform_0(%arg0: i32) -> (i32, i32, i32) {
    %c0_i32 = arith.constant 0 : i32
    %c0_i32_0 = arith.constant 0 : i32
    %c0_i32_1 = arith.constant 0 : i32
    return %c0_i32, %c0_i32_0, %arg0 : i32, i32, i32
  }
  func.func @transform_1(%arg0: i32) -> (i32, i32, i32) {
    %c0_i32 = arith.constant 0 : i32
    %c0_i32_0 = arith.constant 0 : i32
    %c0_i32_1 = arith.constant 0 : i32
    return %c0_i32, %c0_i32_0, %arg0 : i32, i32, i32
  }
  func.func @transform_2(%arg0: i32) -> (i32, i32) {
    %c0_i32 = arith.constant 0 : i32
    %c0_i32_0 = arith.constant 0 : i32
    return %c0_i32, %arg0 : i32, i32
  }
  func.func @transform_3(%arg0: i32) -> (i32, i32, i32) {
    %c0_i32 = arith.constant 0 : i32
    %c0_i32_0 = arith.constant 0 : i32
    %c0_i32_1 = arith.constant 0 : i32
    return %arg0, %c0_i32, %c0_i32_0 : i32, i32, i32
  }
}

</mosaic_0001>

<bundles_post_ra>
// kernel: tpu_custom_call.1
= control target key start
LH: loop header
LB: loop body
LE: loop exit
PB: predicated region body
PF: predicated region fallthrough
CT: control target
= control target key end

     0   :  { %vm607_vm0 = vcmask 15360   ;;  %s603_s0 = inlined_call_operand.vmem [shape: f32[16,8,2], index: 0, kind: input, shape index: {}]   ;;  %s604_s1 = inlined_call_operand.vmem [shape: f32[16,8,2], index: 1, kind: input, shape index: {}]   ;;  %s605_s2 = inlined_call_operand.vmem [shape: f32[1,2], index: 2, kind: input, shape index: {}]   ;;  %s606_s3 = inlined_call_operand.hbm [shape: f32[1,1,1], index: 3, kind: output, shape index: {}]  }
   0x1   :  { %v332_v0 = vld [vmem:[%s603_s0] sm:$0xff]  ;;  %v337_v1 = vld [vmem:[%s603_s0 + $0x8] sm:$0xff]  ;;  %v342_v2 = vld [vmem:[%s603_s0 + $0x10] sm:$0xff] }
   0x2   :  { %v347_v3 = vld [vmem:[%s603_s0 + $0x18] sm:$0xff]  ;;  %v352_v4 = vld [vmem:[%s603_s0 + $0x20] sm:$0xff]  ;;  %v357_v5 = vld [vmem:[%s603_s0 + $0x28] sm:$0xff]  ;;  %v48_v6 = vsel %vm607_vm0, %v332_v0, -inf  ;;  %v49_v7 = vsel %vm607_vm0, %v337_v1, -inf  ;;  %v50_v8 = vsel %vm607_vm0, %v342_v2, -inf }
   0x3   :  { %v368_v9 = vld [vmem:[%s603_s0 + $0x30] sm:$0xff]  ;;  %v373_v10 = vld [vmem:[%s603_s0 + $0x38] sm:$0xff]  ;;  %v378_v11 = vld [vmem:[%s603_s0 + $0x40] sm:$0xff]  ;;  %v51_v12 = vsel %vm607_vm0, %v347_v3, -inf  ;;  %v52_v13 = vsel %vm607_vm0, %v352_v4, -inf  ;;  %v54_v14 = vsel %vm607_vm0, %v357_v5, -inf }
   0x4   :  { %v24_v15 = vld [vmem:[%s603_s0 + $0x48] sm:$0xff]  ;;  %v25_v16 = vld [vmem:[%s603_s0 + $0x50] sm:$0xff]  ;;  %v26_v17 = vld [vmem:[%s603_s0 + $0x58] sm:$0xff]  ;;  %v53_v18 = vmax.f32 %v48_v6, %v52_v13  ;;  %v55_v19 = vmax.f32 %v49_v7, %v54_v14  ;;  %v56_v20 = vsel %vm607_vm0, %v368_v9, -inf  ;;  %v58_v21 = vsel %vm607_vm0, %v373_v10, -inf }
   0x5   :  { %v27_v22 = vld [vmem:[%s603_s0 + $0x60] sm:$0xff]  ;;  %v28_v23 = vld [vmem:[%s603_s0 + $0x68] sm:$0xff]  ;;  %v29_v24 = vld [vmem:[%s603_s0 + $0x70] sm:$0xff]  ;;  %v57_v25 = vmax.f32 %v50_v8, %v56_v20  ;;  %v59_v26 = vmax.f32 %v51_v12, %v58_v21  ;;  %v60_v27 = vsel %vm607_vm0, %v378_v11, -inf  ;;  %v62_v28 = vsel %vm607_vm0, %v24_v15, -inf }
   0x6   :  { %v30_v29 = vld [vmem:[%s603_s0 + $0x78] sm:$0xff]  ;;  %v61_v30 = vmax.f32 %v53_v18, %v60_v27  ;;  %v63_v31 = vmax.f32 %v55_v19, %v62_v28  ;;  %v64_v32 = vsel %vm607_vm0, %v25_v16, -inf  ;;  %v66_v33 = vsel %vm607_vm0, %v26_v17, -inf }
   0x7   :  { %v65_v34 = vmax.f32 %v57_v25, %v64_v32  ;;  %v67_v35 = vmax.f32 %v59_v26, %v66_v33  ;;  %v68_v36 = vsel %vm607_vm0, %v27_v22, -inf  ;;  %v70_v37 = vsel %vm607_vm0, %v28_v23, -inf }
   0x8   :  { %v69_v38 = vmax.f32 %v61_v30, %v68_v36  ;;  %v71_v39 = vmax.f32 %v63_v31, %v70_v37  ;;  %v72_v40 = vsel %vm607_vm0, %v29_v24, -inf  ;;  %v74_v41 = vsel %vm607_vm0, %v30_v29, -inf }
   0x9   :  { %v73_v42 = vmax.f32 %v65_v34, %v72_v40  ;;  %v75_v43 = vmax.f32 %v67_v35, %v74_v41 }
   0xa   :  { %v76_v44 = vmax.f32 %v69_v38, %v71_v39 }
   0xb   :  { %v77_v45 = vmax.f32 %v73_v42, %v75_v43 }
   0xc   :  { %8 = vsyncpa [#allocation3], 0  ;;  %v306_v47 = vmov 16   ;;  %v31_v31 = vld [vmem:[%s604_s1] sm:$0xff]  ;;  %v32_v32 = vld [vmem:[%s604_s1 + $0x8] sm:$0xff] }
   0xd   :  { %v420_v46 = vmax.f32 %v76_v44, %v77_v45  ;;  %v33_v33 = vld [vmem:[%s604_s1 + $0x10] sm:$0xff]  ;;  %v34_v34 = vld [vmem:[%s604_s1 + $0x18] sm:$0xff]  ;;  %v35_v38 = vld [vmem:[%s604_s1 + $0x20] sm:$0xff] }
   0xe   :  { %v36_v40 = vld [vmem:[%s604_s1 + $0x28] sm:$0xff] }
   0xf   :  { %vm79_vm1 = vcmp.eq.f32.partialorder %v332_v0, %v420_v46  ;;  %vm80_vm2 = vcmp.eq.f32.partialorder %v337_v1, %v420_v46  ;;  %vm81_vm3 = vcmp.eq.f32.partialorder %v342_v2, %v420_v46  ;;  %vm82_vm4 = vcmp.eq.f32.partialorder %v347_v3, %v420_v46 }
  0x10   :  { %vm83_vm5 = vcmp.eq.f32.partialorder %v352_v4, %v420_v46  ;;  %vm84_vm6 = vcmp.eq.f32.partialorder %v357_v5, %v420_v46  ;;  %vm85_vm7 = vcmp.eq.f32.partialorder %v368_v9, %v420_v46  ;;  %vm86_vm8 = vcmp.eq.f32.partialorder %v373_v10, %v420_v46 }
  0x11   :  { %vm87_vm9 = vcmp.eq.f32.partialorder %v378_v11, %v420_v46  ;;  %vm88_vm10 = vcmp.eq.f32.partialorder %v24_v15, %v420_v46  ;;  %vm89_vm11 = vcmp.eq.f32.partialorder %v25_v16, %v420_v46  ;;  %vm90_vm12 = vcmp.eq.f32.partialorder %v26_v17, %v420_v46 }
  0x12   :  { %vm91_vm13 = vcmp.eq.f32.partialorder %v27_v22, %v420_v46  ;;  %vm92_vm14 = vcmp.eq.f32.partialorder %v28_v23, %v420_v46  ;;  %vm93_vm15 = vcmp.eq.f32.partialorder %v29_v24, %v420_v46  ;;  %vm94_vm0 = vcmp.eq.f32.partialorder %v30_v29, %v420_v46 }
  0x13   :  { %v95_v48 = vsel %vm79_vm1, 0, %v306_v47  ;;  %v96_v49 = vsel %vm80_vm2, 1, %v306_v47  ;;  %v97_v50 = vsel %vm81_vm3, 2, %v306_v47  ;;  %v98_v51 = vsel %vm82_vm4, 3, %v306_v47 }
  0x14   :  { %v99_v52 = vsel %vm83_vm5, 4, %v306_v47  ;;  %v100_v53 = vsel %vm84_vm6, 5, %v306_v47  ;;  %v101_v54 = vsel %vm85_vm7, 6, %v306_v47  ;;  %v102_v55 = vsel %vm86_vm8, 7, %v306_v47 }
  0x15   :  { %v103_v56 = vsel %vm87_vm9, 8, %v306_v47  ;;  %v104_v57 = vsel %vm88_vm10, 9, %v306_v47  ;;  %v105_v58 = vsel %vm89_vm11, 10, %v306_v47  ;;  %v106_v59 = vsel %vm90_vm12, 11, %v306_v47 }
  0x16   :  { %v107_v60 = vsel %vm91_vm13, 12, %v306_v47  ;;  %v108_v61 = vsel %vm92_vm14, 13, %v306_v47  ;;  %v109_v62 = vsel %vm93_vm15, 14, %v306_v47  ;;  %v110_v63 = vsel %vm94_vm0, 15, %v306_v47  ;;  %v37_v47 = vld [vmem:[%s604_s1 + $0x30] sm:$0xff] }
  0x17   :  { %vm608_vm1 = vcmask 15360  }
  0x18   :  { %v111_v0 = vsel %vm608_vm1, %v95_v48, 2147483647  ;;  %vm609_vm2 = vmmov %vm608_vm1  ;;  %v133_v14 = vsel %vm608_vm1, %v105_v58, 2147483647 }
  0x19   :  { %v112_v1 = vsel %vm609_vm2, %v96_v49, 2147483647  ;;  %vm610_vm3 = vmmov %vm608_vm1 }
  0x1a   :  { %v113_v2 = vsel %vm610_vm3, %v97_v50, 2147483647  ;;  %vm611_vm4 = vmmov %vm608_vm1 }
  0x1b   :  { %v114_v3 = vsel %vm611_vm4, %v98_v51, 2147483647  ;;  %vm612_vm5 = vmmov %vm608_vm1  ;;  %v38_v51 = vld [vmem:[%s604_s1 + $0x38] sm:$0xff] }
  0x1c   :  { %v115_v4 = vsel %vm612_vm5, %v99_v52, 2147483647  ;;  %vm613_vm6 = vmmov %vm608_vm1 }
  0x1d   :  { %v118_v5 = vsel %vm613_vm6, %v100_v53, 2147483647  ;;  %vm116_vm7 = vcmp.lt.s32.totalorder %v111_v0, %v115_v4  ;;  %vm614_vm9 = vmmov %vm608_vm1 }
  0x1e   :  { %vm119_vm8 = vcmp.lt.s32.totalorder %v112_v1, %v118_v5  ;;  %v121_v6 = vsel %vm614_vm9, %v101_v54, 2147483647  ;;  %vm615_vm10 = vmmov %vm608_vm1  ;;  %v117_v8 = vsel %vm116_vm7, %v111_v0, %v115_v4 }
  0x1f   :  { %v124_v7 = vsel %vm615_vm10, %v102_v55, 2147483647  ;;  %v120_v9 = vsel %vm119_vm8, %v112_v1, %v118_v5  ;;  %vm122_vm0 = vcmp.lt.s32.totalorder %v113_v2, %v121_v6  ;;  %vm616_vm12 = vmmov %vm608_vm1  ;;  %v39_v55 = vld [vmem:[%s604_s1 + $0x40] sm:$0xff] }
  0x20   :  { %vm125_vm11 = vcmp.lt.s32.totalorder %v114_v3, %v124_v7  ;;  %v123_v10 = vsel %vm122_vm0, %v113_v2, %v121_v6  ;;  %v127_v12 = vsel %vm616_vm12, %v103_v56, 2147483647  ;;  %vm617_vm13 = vmmov %vm608_vm1 }
  0x21   :  { %v126_v11 = vsel %vm125_vm11, %v114_v3, %v124_v7  ;;  %v130_v13 = vsel %vm617_vm13, %v104_v57, 2147483647  ;;  %vm128_vm14 = vcmp.lt.s32.totalorder %v117_v8, %v127_v12  ;;  %vm618_vm2 = vmmov %vm608_vm1  ;;  %vm134_vm3 = vcmp.lt.s32.totalorder %v123_v10, %v133_v14  ;;  %v42_v3 = vld [vmem:[%s604_s1 + $0x58] sm:$0xff]  ;;  %v43_v7 = vld [vmem:[%s604_s1 + $0x60] sm:$0xff] }
  0x22   :  { %vm131_vm15 = vcmp.lt.s32.totalorder %v120_v9, %v130_v13  ;;  %v136_v15 = vsel %vm618_vm2, %v106_v59, 2147483647  ;;  %v129_v16 = vsel %vm128_vm14, %v117_v8, %v127_v12  ;;  %v135_v18 = vsel %vm134_vm3, %v123_v10, %v133_v14  ;;  %vm619_vm5 = vmmov %vm608_vm1  ;;  %v40_v59 = vld [vmem:[%s604_s1 + $0x48] sm:$0xff] }
  0x23   :  { %v132_v17 = vsel %vm131_vm15, %v120_v9, %v130_v13  ;;  %vm137_vm4 = vcmp.lt.s32.totalorder %v126_v11, %v136_v15  ;;  %v139_v20 = vsel %vm619_vm5, %v107_v60, 2147483647  ;;  %vm620_vm6 = vmmov %vm608_vm1 }
  0x24   :  { %v138_v19 = vsel %vm137_vm4, %v126_v11, %v136_v15  ;;  %v142_v21 = vsel %vm620_vm6, %v108_v61, 2147483647  ;;  %vm140_vm7 = vcmp.lt.s32.totalorder %v129_v16, %v139_v20  ;;  %vm621_vm9 = vmmov %vm608_vm1  ;;  %v44_v11 = vld [vmem:[%s604_s1 + $0x68] sm:$0xff]  ;;  %v45_v15 = vld [vmem:[%s604_s1 + $0x70] sm:$0xff] }
  0x25   :  { %vm143_vm8 = vcmp.lt.s32.totalorder %v132_v17, %v142_v21  ;;  %v145_v22 = vsel %vm621_vm9, %v109_v62, 2147483647  ;;  %vm622_vm10 = vmmov %vm608_vm1  ;;  %v141_v24 = vsel %vm140_vm7, %v129_v16, %v139_v20 }
  0x26   :  { %v148_v23 = vsel %vm622_vm10, %v110_v63, 2147483647  ;;  %v144_v25 = vsel %vm143_vm8, %v132_v17, %v142_v21  ;;  %vm146_vm0 = vcmp.lt.s32.totalorder %v135_v18, %v145_v22  ;;  %vm623_vm7 = vmmov %vm620_vm6  ;;  %v41_v63 = vld [vmem:[%s604_s1 + $0x50] sm:$0xff] }
  0x27   :  { %vm149_vm11 = vcmp.lt.s32.totalorder %v138_v19, %v148_v23  ;;  %v147_v26 = vsel %vm146_vm0, %v135_v18, %v145_v22  ;;  %vm151_vm12 = vcmp.lt.s32.totalorder %v141_v24, %v144_v25  ;;  %vm624_vm8 = vmmov %vm620_vm6 }
  0x28   :  { %v150_v27 = vsel %vm149_vm11, %v138_v19, %v148_v23  ;;  %v152_v28 = vsel %vm151_vm12, %v141_v24, %v144_v25  ;;  %vm625_vm10 = vmmov %vm620_vm6  ;;  %v46_v19 = vld [vmem:[%s604_s1 + $0x78] sm:$0xff] }
  0x29   :  { %vm153_vm13 = vcmp.lt.s32.totalorder %v147_v26, %v150_v27  ;;  %vm626_vm11 = vmmov %vm620_vm6 }
  0x2a   :  { %v154_v29 = vsel %vm153_vm13, %v147_v26, %v150_v27  ;;  %vm627_vm13 = vmmov %vm620_vm6 }
  0x2b   :  { %vm155_vm14 = vcmp.lt.s32.totalorder %v152_v28, %v154_v29 }
  0x2c   :  { %v504_v30 = vsel %vm155_vm14, %v152_v28, %v154_v29 }
  0x2d   :  { %vm157_vm15 = vcmp.eq.s32.totalorder %v504_v30, 0  ;;  %vm158_vm1 = vcmp.eq.s32.totalorder %v504_v30, 1  ;;  %vm159_vm2 = vcmp.eq.s32.totalorder %v504_v30, 2  ;;  %vm160_vm3 = vcmp.eq.s32.totalorder %v504_v30, 3 }
  0x2e   :  { %v173_v35 = vsel %vm157_vm15, %v31_v31, 0.0  ;;  %v174_v36 = vsel %vm158_vm1, %v32_v32, 0.0  ;;  %v175_v37 = vsel %vm159_vm2, %v33_v33, 0.0  ;;  %vm161_vm4 = vcmp.eq.s32.totalorder %v504_v30, 4  ;;  %vm628_vm15 = vmmov %vm620_vm6 }
  0x2f   :  { %v176_v39 = vsel %vm160_vm3, %v34_v34, 0.0  ;;  %vm162_vm5 = vcmp.eq.s32.totalorder %v504_v30, 5  ;;  %v189_v41 = vsel %vm620_vm6, %v173_v35, 0.0  ;;  %v190_v42 = vsel %vm623_vm7, %v174_v36, 0.0  ;;  %vm629_vm2 = vmmov %vm620_vm6 }
  0x30   :  { %v192_v43 = vsel %vm624_vm8, %v175_v37, 0.0  ;;  %v177_v44 = vsel %vm161_vm4, %v35_v38, 0.0  ;;  %v191_v45 = vadd.f32 %v190_v42, %v189_v41  ;;  %vm163_vm9 = vcmp.eq.s32.totalorder %v504_v30, 6  ;;  %vm630_vm4 = vmmov %vm629_vm2 }
  0x31   :  { %v194_v48 = vsel %vm625_vm10, %v176_v39, 0.0  ;;  %v178_v49 = vsel %vm162_vm5, %v36_v40, 0.0  ;;  %vm164_vm0 = vcmp.eq.s32.totalorder %v504_v30, 7  ;;  %v196_v52 = vsel %vm626_vm11, %v177_v44, 0.0  ;;  %vm631_vm6 = vmmov %vm629_vm2 }
  0x32   :  { %v193_v50 = vadd.f32 %v192_v43, %v191_v45  ;;  %v179_v53 = vsel %vm163_vm9, %v37_v47, 0.0  ;;  %vm165_vm12 = vcmp.eq.s32.totalorder %v504_v30, 8  ;;  %v198_v56 = vsel %vm627_vm13, %v178_v49, 0.0  ;;  %vm632_vm8 = vmmov %vm629_vm2 }
  0x33   :  { %v180_v57 = vsel %vm164_vm0, %v38_v51, 0.0  ;;  %vm166_vm14 = vcmp.eq.s32.totalorder %v504_v30, 9  ;;  %v200_v60 = vsel %vm628_vm15, %v179_v53, 0.0  ;;  %v181_v61 = vsel %vm165_vm12, %v39_v55, 0.0  ;;  %vm633_vm10 = vmmov %vm629_vm2 }
  0x34   :  { %v195_v54 = vadd.f32 %v194_v48, %v193_v50  ;;  %vm167_vm1 = vcmp.eq.s32.totalorder %v504_v30, 10  ;;  %v202_v0 = vsel %vm629_vm2, %v180_v57, 0.0  ;;  %v182_v1 = vsel %vm166_vm14, %v40_v59, 0.0  ;;  %vm634_vm11 = vmmov %vm629_vm2 }
  0x35   :  { %vm168_vm3 = vcmp.eq.s32.totalorder %v504_v30, 11  ;;  %v204_v4 = vsel %vm630_vm4, %v181_v61, 0.0  ;;  %v183_v5 = vsel %vm167_vm1, %v41_v63, 0.0  ;;  %vm169_vm5 = vcmp.eq.s32.totalorder %v504_v30, 12  ;;  %vm635_vm12 = vmmov %vm629_vm2 }
  0x36   :  { %v197_v58 = vadd.f32 %v196_v52, %v195_v54  ;;  %v206_v8 = vsel %vm631_vm6, %v182_v1, 0.0  ;;  %v184_v9 = vsel %vm168_vm3, %v42_v3, 0.0  ;;  %vm170_vm7 = vcmp.eq.s32.totalorder %v504_v30, 13  ;;  %vm636_vm13 = vmmov %vm629_vm2 }
  0x37   :  { %v208_v12 = vsel %vm632_vm8, %v183_v5, 0.0  ;;  %v185_v13 = vsel %vm169_vm5, %v43_v7, 0.0  ;;  %vm171_vm9 = vcmp.eq.s32.totalorder %v504_v30, 14  ;;  %v210_v16 = vsel %vm633_vm10, %v184_v9, 0.0  ;;  %vm637_vm14 = vmmov %vm629_vm2 }
  0x38   :  { %v199_v62 = vadd.f32 %v198_v56, %v197_v58  ;;  %v186_v17 = vsel %vm170_vm7, %v44_v11, 0.0  ;;  %vm172_vm0 = vcmp.eq.s32.totalorder %v504_v30, 15  ;;  %v212_v20 = vsel %vm634_vm11, %v185_v13, 0.0  ;;  %v220_v30 = vld [vmem:[%s605_s2] sm:$0x1]  ;;  %vm638_vm3 = vmmov %vm630_vm4  ;;  %s308_s2 = smov [#allocation2]  }
  0x39   :  { %v187_v21 = vsel %vm171_vm9, %v45_v15, 0.0  ;;  %v214_v23 = vsel %vm635_vm12, %v186_v17, 0.0  ;;  %v188_v24 = vsel %vm172_vm0, %v46_v19, 0.0  ;;  %v227_v31 = vlaneseq  ;;  %s267_s21 = sshll.u32 %s308_s2, 4  ;;  %s268_s21 = int_to_ptr.vmem [resolvable:$true] %s267_s21 }
  0x3a   :  { %v201_v2 = vadd.f32 %v200_v60, %v199_v62  ;;  %v216_v26 = vsel %vm636_vm13, %v187_v21, 0.0  ;;  %v218_v28 = vsel %vm637_vm14, %v188_v24, 0.0  ;;  %vm223_vm15 = vcmp.ge.f32.partialorder %v220_v30, 0.0  ;;  %s282_s24 = scalar_lea.vmem %s268_s21, 16  ;;  %s286_s25 = scalar_lea.vmem %s268_s21, 32 }
  0x3b   :  { %v228_v33 = vshrl.u32 %v227_v31, 7  ;;  %v307_v35 = vmov 0   ;;  %v234_v40 = vand.u32 127, %v227_v31  ;;  %vm259_vm4 = vcmask 0   ;;  %p283_p0 = scmp.ne.s32.totalorder %s268_s21, %s282_s24  ;;  %p287_p1 = scmp.lt.s32.totalorder %s268_s21, %s268_s21 }
  0x3c   :  { %v203_v6 = vadd.f32 %v202_v0, %v201_v2  ;;  %v226_v36 = vsel %vm223_vm15, 1, %v307_v35  ;;  %p288_p2 = scmp.lt.s32.totalorder %s286_s25, %s282_s24 }
  0x3d   :  { %v229_v34 = vsub.s32 0, %v228_v33  ;;  %vm238_vm2 = vcmp.lt.s32.totalorder %v234_v40, 2 }
  0x3e   :  { %v205_v10 = vadd.f32 %v204_v4, %v203_v6  ;;  %p289_p3 = por %p288_p2, %p287_p1 }
  0x3f   :  { %v230_v37 = vrot.slane %v226_v36, %v229_v34  ;;  %v243_v41 = vrot.slane %v220_v30, %v229_v34 }
  0x40   :  { %v207_v14 = vadd.f32 %v206_v8, %v205_v10  ;;  %p290_p4 = pnand %p289_p3, %p283_p0 }
  0x41   :  { %vm231_vm1 = vcmp.eq.s32.totalorder %v230_v37, 1 }
  0x42   :  { %v209_v18 = vadd.f32 %v208_v12, %v207_v14 }
  0x44   :  { %v211_v22 = vadd.f32 %v210_v16, %v209_v18 }
  0x46   :  { %v213_v25 = vadd.f32 %v212_v20, %v211_v22 }
  0x48   :  { %v215_v27 = vadd.f32 %v214_v23, %v213_v25 }
  0x4a   :  { %v217_v29 = vadd.f32 %v216_v26, %v215_v27 }
  0x4c   :  { %v219_v32 = vadd.f32 %v218_v28, %v217_v29 }
  0x4e   :  { %280 = vrcp.f32 %v219_v32 }
  0x58   :  { %v281_v38 = vpop.eup %280 }
  0x59   :  { %v222_v39 = vmul.f32 %v281_v38, %v420_v46 }
  0x5b   :  { %v224_v42 = vmin.f32 %v222_v39, 1.2  ;;  %v225_v43 = vmax.f32 %v222_v39, 0.8 }
  0x5d   :  { %v232_v44 = vsel %vm231_vm1, %v224_v42, %v225_v43 }
  0x5e   :  { %v245_v45 = vmul.f32 %v243_v41, %v232_v44 }
  0x60   :  { %v246_v47 = vsel %vm238_vm2, %v245_v45, 0.0 }
  0x61   :  { %v247_v48 = vsel %vm638_vm3, %v246_v47, 0.0 }
  0x62   :  { %248 = vadd.xlane.f32.xlu0 %v247_v48 }
  0xef   :  { %v249_v49 = vpop.xlane.xlu0 %248 }
  0xf0   :  { %v250_v50 = vrot.slane %v249_v49, 4 }
  0xf2   :  { %v251_v51 = vadd.f32 %v250_v50, %v249_v49 }
  0xf4   :  { %v252_v52 = vrot.slane %v251_v51, 2 }
  0xf6   :  { %v253_v53 = vadd.f32 %v252_v52, %v251_v51 }
  0xf8   :  { %v254_v54 = vrot.slane %v253_v53, 1 }
  0xfa   :  { %v255_v55 = vadd.f32 %v254_v54, %v253_v53 }
  0xfc   :  { %275 = vpush %v255_v55 }
 0x12d   :  { %s276_s22 = spop %275 }
 0x12e   :  { %s257_s23 = ssub.f32 0.0, %s276_s22 }
 0x130   :  { %v258_v46 = vstv %s257_s23 }
 0x131   :  { %260 = vst.msk [vmem:[#allocation2] sm:$0x1] %vm259_vm4, %v258_v46 }
 0x132   :  { %293 = shalt.err (!%p290_p4)
}
 0x133   :  { %s294_s28 = scalar_lea.hbm %s606_s3, 16 }
 0x134   :  { %p295_p5 = scmp.ne.s32.totalorder %s606_s3, %s294_s28  ;;  %p298_p6 = scmp.lt.u32.totalorder %s294_s28, %s606_s3 }
 0x136   :  { %p300_p7 = pnand %p298_p6, %p295_p5 }
 0x138   :  { %303 = shalt.err (!%p300_p7)
}
 0x139   :  { %270 = dma.vmem_to_hbm [thread:$0]  %s268_s21, 16, %s606_s3, [#allocation3]  }
 0x13a   :  { %304 = dma.done.wait [#allocation3], 16  }
 0x13b   :  { %305 = vsyncadd [#allocation3], 4294967280 }
 0x13c   :  { %274 = vsyncpa [#allocation3], 1 }

</bundles_post_ra>
